<compile_context>
chip_gen: v6e
topology: v6e:2x2x1
jax: 0.10.0
libtpu: 0.0.40
codegen_flags: <defaults>
</compile_context>

<pallas_src>
import math
import functools

import jax
import jax.numpy as jnp
from jax.experimental import pallas as pl
from jax.experimental.pallas import tpu as pltpu


# ----------------------------------------------------------------------------
# helpers
# ----------------------------------------------------------------------------
def _pick_tile(dim, target, align):
    """Largest tile <= target that divides `dim` and is a multiple of `align`;
    falls back to the full dim (block == full extent is always legal)."""
    if dim <= target:
        return dim
    t = (target // align) * align
    while t >= align:
        if dim % t == 0:
            return t
        t -= align
    return dim


# ----------------------------------------------------------------------------
# Tiled Conv1D (x @ w + b)
# ----------------------------------------------------------------------------
def _dense_kernel(x_ref, w_ref, b_ref, o_ref, acc_ref):
    k = pl.program_id(2)

    @pl.when(k == 0)
    def _init():
        acc_ref[...] = jnp.zeros_like(acc_ref)

    acc_ref[...] += jnp.dot(x_ref[...], w_ref[...],
                            preferred_element_type=jnp.float32)

    @pl.when(k == pl.num_programs(2) - 1)
    def _finalize():
        o_ref[...] = (acc_ref[...] + b_ref[...]).astype(o_ref.dtype)


def dense(x2d, w, b, *, targets=(256, 256, 512)):
    """Conv1D: x2d @ w + b with an (M, N, K) tiled, pipelined grid."""
    M, K = x2d.shape
    N = w.shape[1]
    tm = _pick_tile(M, targets[0], 8)     # sublane-aligned (or full)
    tn = _pick_tile(N, targets[1], 128)   # lane-aligned    (or full)
    tk = _pick_tile(K, targets[2], 128)   # lane-aligned    (or full)
    grid = (M // tm, N // tn, K // tk)
    return pl.pallas_call(
        _dense_kernel,
        out_shape=jax.ShapeDtypeStruct((M, N), x2d.dtype),
        grid=grid,
        in_specs=[
            pl.BlockSpec((tm, tk), lambda i, j, k: (i, k)),
            pl.BlockSpec((tk, tn), lambda i, j, k: (k, j)),
            pl.BlockSpec((1, tn), lambda i, j, k: (0, j)),
        ],
        out_specs=pl.BlockSpec((tm, tn), lambda i, j, k: (i, j)),
        scratch_shapes=[pltpu.VMEM((tm, tn), jnp.float32)],
        compiler_params=pltpu.CompilerParams(
            dimension_semantics=("parallel", "parallel", "arbitrary")),
    )(x2d, w, b.reshape(1, N))


# ----------------------------------------------------------------------------
# Flash-style causal attention
# ----------------------------------------------------------------------------
def _flash_attn_kernel(q_ref, k_ref, v_ref, o_ref, m_sc, l_sc, acc_sc,
                       *, tile, sm_scale):
    qi = pl.program_id(1)
    ki = pl.program_id(2)

    @pl.when(ki == 0)
    def _init():
        m_sc[...] = jnp.full_like(m_sc, -jnp.inf)
        l_sc[...] = jnp.zeros_like(l_sc)
        acc_sc[...] = jnp.zeros_like(acc_sc)

    # causal block skipping: KV blocks strictly above the diagonal do no work
    @pl.when(ki <= qi)
    def _compute():
        q = q_ref[0]                                          # (tile, d)
        if sm_scale != 1.0:
            q = q * sm_scale                                  # fold scale into q
        k = k_ref[0]                                          # (tile, d)
        v = v_ref[0]                                          # (tile, d)
        # scores = q @ k^T (contraction on d), f32 accumulation on the MXU
        s = jax.lax.dot_general(q, k, (((1,), (1,)), ((), ())),
                                preferred_element_type=jnp.float32)  # (tile, tile)
        # in-kernel causal mask (matches reference's w*b - 1e10*(1-b))
        row = qi * tile + jax.lax.broadcasted_iota(jnp.int32, s.shape, 0)
        col = ki * tile + jax.lax.broadcasted_iota(jnp.int32, s.shape, 1)
        s = jnp.where(col <= row, s, -1e10)
        # online softmax update
        m_prev = m_sc[...]
        m_new = jnp.maximum(m_prev, jnp.max(s, axis=-1, keepdims=True))
        alpha = jnp.exp(m_prev - m_new)
        p = jnp.exp(s - m_new)
        l_sc[...] = alpha * l_sc[...] + jnp.sum(p, axis=-1, keepdims=True)
        acc_sc[...] = alpha * acc_sc[...] + jnp.dot(
            p.astype(v.dtype), v, preferred_element_type=jnp.float32)
        m_sc[...] = m_new

    @pl.when(ki == pl.num_programs(2) - 1)
    def _finalize():
        # normalize the (tile, d) accumulator once (not the (tile, T) probs)
        o_ref[0] = (acc_sc[...] * pl.reciprocal(l_sc[...], approx=False)
                    ).astype(o_ref.dtype)


def flash_attention(q, k, v, *, sm_scale=1.0, block_target=256):
    """q, k, v: (B*H, T, d) -> (B*H, T, d) causal attention."""
    BH, T, d = q.shape
    tile = _pick_tile(T, block_target, 8)
    nblk = T // tile
    kernel = functools.partial(_flash_attn_kernel, tile=tile, sm_scale=sm_scale)
    # for skipped (above-diagonal) kv steps, map to the last valid block so
    # Pallas sees an unchanged block index and issues no DMA.
    kv_map = lambda bh, qi, ki: (bh, jnp.minimum(ki, qi), 0)
    return pl.pallas_call(
        kernel,
        out_shape=jax.ShapeDtypeStruct((BH, T, d), q.dtype),
        grid=(BH, nblk, nblk),
        in_specs=[
            pl.BlockSpec((1, tile, d), lambda bh, qi, ki: (bh, qi, 0)),
            pl.BlockSpec((1, tile, d), kv_map),
            pl.BlockSpec((1, tile, d), kv_map),
        ],
        out_specs=pl.BlockSpec((1, tile, d), lambda bh, qi, ki: (bh, qi, 0)),
        scratch_shapes=[
            pltpu.VMEM((tile, 1), jnp.float32),   # running max
            pltpu.VMEM((tile, 1), jnp.float32),   # running sum
            pltpu.VMEM((tile, d), jnp.float32),   # output accumulator
        ],
        compiler_params=pltpu.CompilerParams(
            dimension_semantics=("parallel", "parallel", "arbitrary")),
    )(q, k, v)


# ----------------------------------------------------------------------------
# Attention module (forward only, layer_past=None path)
# ----------------------------------------------------------------------------
class AttentionPallas:
    def __init__(self, n_embd, n_head, n_ctx, scale=False, key=None,
                 compute_dtype=None, attn_block_target=256,
                 dense_block_targets=(256, 256, 512)):
        assert n_embd % n_head == 0
        self.n_embd = n_embd
        self.n_head = n_head
        self.n_ctx = n_ctx
        self.scale = scale
        # optional mixed precision for the MXU matmuls (e.g. jnp.bfloat16 on
        # v6e/v7x); accumulation stays f32.  None keeps input dtype (f32 here).
        self.compute_dtype = compute_dtype
        self.attn_block_target = attn_block_target
        self.dense_block_targets = dense_block_targets

        k1, k2 = jax.random.split(key)
        # Conv1D weights: (nx, nf) layout, init normal(std=0.02), zero bias
        self.w_attn = (0.02 * jax.random.normal(k1, (n_embd, 3 * n_embd))).astype(jnp.float32)
        self.b_attn = jnp.zeros((3 * n_embd,), jnp.float32)
        self.w_proj = (0.02 * jax.random.normal(k2, (n_embd, n_embd))).astype(jnp.float32)
        self.b_proj = jnp.zeros((n_embd,), jnp.float32)
        # causal bias buffer (kept for parity with the PyTorch module / reference)
        self.bias = jnp.tril(jnp.ones((n_ctx, n_ctx), jnp.float32))

    def __call__(self, x):
        B, T, C = x.shape
        H = self.n_head
        d = C // H
        cd = self.compute_dtype

        xc = x if cd is None else x.astype(cd)
        w_attn = self.w_attn if cd is None else self.w_attn.astype(cd)
        w_proj = self.w_proj if cd is None else self.w_proj.astype(cd)

        # c_attn (Conv1D), tiled + pipelined
        qkv = dense(xc.reshape(B * T, C), w_attn, self.b_attn,
                    targets=self.dense_block_targets)             # (B*T, 3C)

        # single reshape+transpose for Q/K/V head split (instead of 3 separate ones)
        qkv_h = qkv.reshape(B, T, 3, H, d).transpose(2, 0, 3, 1, 4)  # (3,B,H,T,d)
        query, key_, value = qkv_h[0], qkv_h[1], qkv_h[2]            # (B,H,T,d) each

        # present = stack((key, value)) in (B,H,T,d) layout, matching the reference
        present = qkv_h[1:3]                                         # (2,B,H,T,d)

        sm_scale = (1.0 / math.sqrt(d)) if self.scale else 1.0

        # flash attention, one (batch*head, q_tile) accumulator streamed over KV
        a = flash_attention(
            query.reshape(B * H, T, d),
            key_.reshape(B * H, T, d),
            value.reshape(B * H, T, d),
            sm_scale=sm_scale,
            block_target=self.attn_block_target,
        ).reshape(B, H, T, d)

        # merge_heads
        a = a.transpose(0, 2, 1, 3).reshape(B, T, C)

        # c_proj (Conv1D), tiled + pipelined
        a = dense(a.reshape(B * T, C), w_proj, self.b_proj,
                  targets=self.dense_block_targets).reshape(B, T, C)
        return a, present


# ----------------------------------------------------------------------------
# Reference (pure JAX) for sanity checking
# ----------------------------------------------------------------------------
def reference_forward(mod: AttentionPallas, x):
    B, T, C = x.shape
    H, d = mod.n_head, C // mod.n_head
    qkv = x.reshape(B * T, C) @ mod.w_attn + mod.b_attn
    qkv = qkv.reshape(B, T, 3 * C)
    q, k, v = jnp.split(qkv, 3, axis=2)
    q = q.reshape(B, T, H, d).transpose(0, 2, 1, 3)
    k = k.reshape(B, T, H, d).transpose(0, 2, 3, 1)
    v = v.reshape(B, T, H, d).transpose(0, 2, 1, 3)
    w = jnp.einsum("bhtd,bhds->bhts", q, k)
    if mod.scale:
        w = w / math.sqrt(d)
    m = mod.bias[:T, :T]
    w = w * m - 1e10 * (1.0 - m)
    w = jax.nn.softmax(w, axis=-1)
    a = jnp.einsum("bhts,bhsd->bhtd", w, v)
    a = a.transpose(0, 2, 1, 3).reshape(B, T, C)
    a = (a.reshape(B * T, C) @ mod.w_proj + mod.b_proj).reshape(B, T, C)
    present = jnp.stack([k.transpose(0, 1, 3, 2), v])
    return a, present


if __name__ == "__main__":
    key = jax.random.PRNGKey(0)
    k_params, k_x, k_params2, k_x2 = jax.random.split(key, 4)

    # --- config 1: small single-block path (B=2, T=8, C=32, H=4) -------------
    B, T, C, H = 2, 8, 32, 4
    mod = AttentionPallas(n_embd=C, n_head=H, n_ctx=T, scale=False, key=k_params)
    x = jax.random.normal(k_x, (B, T, C), dtype=jnp.float32)

    a, present = mod(x)
    a = jax.block_until_ready(a)
    present = jax.block_until_ready(present)
    assert a.shape == (B, T, C)
    assert present.shape == (2, B, H, T, C // H)

    a_ref, present_ref = reference_forward(mod, x)
    assert jnp.allclose(a, a_ref, atol=1e-4, rtol=1e-4)
    assert jnp.allclose(present, present_ref, atol=1e-5, rtol=1e-5)

    # --- config 2: exercises multi-tile grids (online softmax across KV blocks,
    #     causal block skipping, scale folding, tiled dense M axis) ------------
    B2, T2, C2, H2 = 1, 16, 32, 4
    mod2 = AttentionPallas(n_embd=C2, n_head=H2, n_ctx=T2, scale=True,
                           key=k_params2, attn_block_target=8,
                           dense_block_targets=(8, 256, 512))
    x2 = jax.random.normal(k_x2, (B2, T2, C2), dtype=jnp.float32)

    a2, present2 = mod2(x2)
    a2 = jax.block_until_ready(a2)
    present2 = jax.block_until_ready(present2)
    assert a2.shape == (B2, T2, C2)
    assert present2.shape == (2, B2, H2, T2, C2 // H2)

    a2_ref, present2_ref = reference_forward(mod2, x2)
    assert jnp.allclose(a2, a2_ref, atol=1e-4, rtol=1e-4)
    assert jnp.allclose(present2, present2_ref, atol=1e-5, rtol=1e-5)

    print("KERNEL_OK")
</pallas_src>

<mosaic_0001>
module attributes {stable_mosaic.version = 11 : i64} {
  func.func @_dense_kernel(%arg0: i32, %arg1: i32, %arg2: i32, %arg3: memref<16x32xf32, #tpu.memory_space<vmem>>, %arg4: memref<32x96xf32, #tpu.memory_space<vmem>>, %arg5: memref<1x96xf32, #tpu.memory_space<vmem>>, %arg6: memref<16x96xf32, #tpu.memory_space<vmem>>, %arg7: memref<16x96xf32, #tpu.memory_space<vmem>>) attributes {dimension_semantics = [#tpu.dimension_semantics<parallel>, #tpu.dimension_semantics<parallel>, #tpu.dimension_semantics<arbitrary>], iteration_bounds = array<i64: 1, 1, 1>, scalar_prefetch = 0 : i64, scratch_operands = 1 : i64, tpu.core_type = #tpu.core_type<tc>, window_params = [{transform_indices = @transform_0, window_bounds = array<i64: 16, 32>}, {transform_indices = @transform_1, window_bounds = array<i64: 32, 96>}, {transform_indices = @transform_2, window_bounds = array<i64: 1, 96>}, {transform_indices = @transform_3, window_bounds = array<i64: 16, 96>}]} {
    %c0_i32 = arith.constant 0 : i32
    %0 = arith.cmpi eq, %arg2, %c0_i32 : i32
    %1 = arith.extui %0 : i1 to i32
    %c0_i32_0 = arith.constant 0 : i32
    %2 = arith.cmpi ne, %1, %c0_i32_0 : i32
    scf.if %2 {
      %cst_10 = arith.constant 0.000000e+00 : f32
      %12 = vector.broadcast %cst_10 : f32 to vector<16x96xf32>
      %c0_11 = arith.constant 0 : index
      %c0_12 = arith.constant 0 : index
      %13 = vector.load %arg7[%c0_11, %c0_12] : memref<16x96xf32, #tpu.memory_space<vmem>>, vector<16x96xf32>
      tpu.vector_store %arg7[%c0_11, %c0_12], %12 {strides = array<i32>} : memref<16x96xf32, #tpu.memory_space<vmem>>, vector<16x96xf32>,
    } else {
    }
    %c0 = arith.constant 0 : index
    %c0_1 = arith.constant 0 : index
    %3 = vector.load %arg7[%c0, %c0_1] : memref<16x96xf32, #tpu.memory_space<vmem>>, vector<16x96xf32>
    %c0_2 = arith.constant 0 : index
    %c0_3 = arith.constant 0 : index
    %4 = vector.load %arg3[%c0_2, %c0_3] : memref<16x32xf32, #tpu.memory_space<vmem>>, vector<16x32xf32>
    %c0_4 = arith.constant 0 : index
    %c0_5 = arith.constant 0 : index
    %5 = vector.load %arg4[%c0_4, %c0_5] : memref<32x96xf32, #tpu.memory_space<vmem>>, vector<32x96xf32>
    %cst = arith.constant dense<0.000000e+00> : vector<16x96xf32>
    %6 = tpu.matmul %4, %5, %cst {dimension_numbers = #tpu.dot_dimension_numbers<[1], [0], [0], [1], [0, 0, 1, 1], [], []>} : vector<16x32xf32>, vector<32x96xf32>, vector<16x96xf32> -> vector<16x96xf32>
    %7 = arith.addf %3, %6 : vector<16x96xf32>
    %c0_6 = arith.constant 0 : index
    %c0_7 = arith.constant 0 : index
    %8 = vector.load %arg7[%c0_6, %c0_7] : memref<16x96xf32, #tpu.memory_space<vmem>>, vector<16x96xf32>
    tpu.vector_store %arg7[%c0_6, %c0_7], %7 {strides = array<i32>} : memref<16x96xf32, #tpu.memory_space<vmem>>, vector<16x96xf32>,
    %c0_i32_8 = arith.constant 0 : i32
    %9 = arith.cmpi eq, %arg2, %c0_i32_8 : i32
    %10 = arith.extui %9 : i1 to i32
    %c0_i32_9 = arith.constant 0 : i32
    %11 = arith.cmpi ne, %10, %c0_i32_9 : i32
    scf.if %11 {
      %c0_10 = arith.constant 0 : index
      %c0_11 = arith.constant 0 : index
      %12 = vector.load %arg7[%c0_10, %c0_11] : memref<16x96xf32, #tpu.memory_space<vmem>>, vector<16x96xf32>
      %c0_12 = arith.constant 0 : index
      %c0_13 = arith.constant 0 : index
      %13 = vector.load %arg5[%c0_12, %c0_13] : memref<1x96xf32, #tpu.memory_space<vmem>>, vector<1x96xf32>
      %14 = vector.broadcast %13 : vector<1x96xf32> to vector<16x96xf32>
      %15 = arith.addf %12, %14 : vector<16x96xf32>
      %c0_14 = arith.constant 0 : index
      %c0_15 = arith.constant 0 : index
      %16 = vector.load %arg6[%c0_14, %c0_15] : memref<16x96xf32, #tpu.memory_space<vmem>>, vector<16x96xf32>
      tpu.vector_store %arg6[%c0_14, %c0_15], %15 {strides = array<i32>} : memref<16x96xf32, #tpu.memory_space<vmem>>, vector<16x96xf32>,
    } else {
    }
    return
  }
  func.func @transform_0(%arg0: i32, %arg1: i32, %arg2: i32) -> (i32, i32) {
    %c0_i32 = arith.constant 0 : i32
    return %arg0, %arg2 : i32, i32
  }
  func.func @transform_1(%arg0: i32, %arg1: i32, %arg2: i32) -> (i32, i32) {
    %c0_i32 = arith.constant 0 : i32
    return %arg2, %arg1 : i32, i32
  }
  func.func @transform_2(%arg0: i32, %arg1: i32, %arg2: i32) -> (i32, i32) {
    %c0_i32 = arith.constant 0 : i32
    %c0_i32_0 = arith.constant 0 : i32
    return %c0_i32, %arg1 : i32, i32
  }
  func.func @transform_3(%arg0: i32, %arg1: i32, %arg2: i32) -> (i32, i32) {
    %c0_i32 = arith.constant 0 : i32
    return %arg0, %arg1 : i32, i32
  }
}

</mosaic_0001>

<bundles_post_ra>
// kernel: tpu_custom_call.1
= control target key start
LH: loop header
LB: loop body
LE: loop exit
PB: predicated region body
PF: predicated region fallthrough
CT: control target
= control target key end

     0   :  { %8 = vsyncpa [#allocation4], 0  ;;  %s326_s0 = inlined_call_operand.hbm [shape: f32[16,32], index: 0, kind: input, shape index: {}]   ;;  %s327_s1 = inlined_call_operand.hbm [shape: f32[32,96], index: 1, kind: input, shape index: {}]   ;;  %s328_s2 = inlined_call_operand.vmem [shape: f32[1,96], index: 2, kind: input, shape index: {}]   ;;  %s329_s3 = inlined_call_operand.hbm [shape: f32[16,96], index: 3, kind: output, shape index: {}]  }
   0x1   :  { %9 = vsyncpa [#allocation7], 0 }
   0x2   :  { %10 = vsyncpa [#allocation5], 0  ;;  %s271_s12 = smov [#allocation3]  }
   0x3   :  { %s16_s13 = sshll.u32 %s271_s12, 4  ;;  %s17_s13 = int_to_ptr.vmem [resolvable:$true] %s16_s13 }
   0x4   :  { %s213_s14 = scalar_lea.vmem %s17_s13, 256  ;;  %p218_p1 = scmp.lt.s32.totalorder %s17_s13, %s17_s13 }
   0x5   :  { %p214_p0 = scmp.ne.s32.totalorder %s17_s13, %s213_s14  ;;  %p219_p2 = scmp.lt.s32.totalorder %s213_s14, %s213_s14 }
   0x7   :  { %p220_p3 = por %p219_p2, %p218_p1 }
   0x9   :  { %p221_p4 = pnand %p220_p3, %p214_p0 }
   0xb   :  { %224 = shalt.err (!%p221_p4)
}
   0xc   :  { %s272_s15 = smov 128   ;;  %s273_s16 = smov 8  }
   0xd   :  { %22 = dma.hbm_to_vmem [thread:$0]  %s326_s0, 256, %s17_s13, [#allocation4], %s272_s15, %s272_s15, %s273_s16  }
   0xe   :  { %s274_s19 = smov [#allocation6]  }
   0xf   :  { %s28_s20 = sshll.u32 %s274_s19, 4  ;;  %s29_s20 = int_to_ptr.vmem [resolvable:$true] %s28_s20 }
  0x10   :  { %s233_s21 = scalar_lea.vmem %s29_s20, 512  ;;  %p238_p6 = scmp.lt.s32.totalorder %s29_s20, %s29_s20 }
  0x11   :  { %p234_p5 = scmp.ne.s32.totalorder %s29_s20, %s233_s21  ;;  %p239_p7 = scmp.lt.s32.totalorder %s233_s21, %s233_s21 }
  0x13   :  { %p240_p8 = por %p239_p7, %p238_p6 }
  0x15   :  { %p241_p9 = pnand %p240_p8, %p234_p5 }
  0x17   :  { %244 = shalt.err (!%p241_p9)
}
  0x18   :  { %34 = dma.hbm_to_vmem [thread:$0]  %s327_s1, 512, %s29_s20, [#allocation7], %s272_s15, %s272_s15, %s273_s16  }
  0x19   :  { %265 = dma.done.wait [#allocation4], 256  }
  0x1a   :  { %266 = vsyncadd [#allocation4], 4294967040 }
  0x1b   :  { %267 = dma.done.wait [#allocation7], 512  }
  0x1c   :  { %268 = vsyncadd [#allocation7], 4294966784  ;;  %vm47_vm0 = vcmask 785408   ;;  %v275_v0 = vmov 0.0   ;;  %vm58_vm1 = vcmask 261120   ;;  %v57_v1 = vld [vmem:[#allocation6 + $0x18] sm:$0xff] }
  0x1d   :  { %49 = vst.msk [vmem:[#allocation2 + $0x8] sm:$0xff] %vm47_vm0, %v275_v0  ;;  %48 = vst.msk [vmem:[#allocation2] sm:$0xff] %vm47_vm0, %v275_v0  ;;  %v56_v2 = vld [vmem:[#allocation6 + $0x10] sm:$0xff]  ;;  %188 = vmatprep.subr.mxu0 %v57_v1  ;;  %v55_v4 = vld [vmem:[#allocation6 + $0x8] sm:$0xff]  ;;  %s276_s24 = smov [#allocation8]  }
  0x1e   :  { %v52_v3 = vld [vmem:[#allocation3] sm:$0xff]  ;;  %189 = vmatpush3.msra.mxu0 %v57_v1  ;;  %v54_v5 = vld [vmem:[#allocation6] sm:$0xff]  ;;  %v53_v6 = vld [vmem:[#allocation3 + $0x8] sm:$0xff]  ;;  %s166_s25 = sshll.u32 %s276_s24, 4  ;;  %s167_s25 = int_to_ptr.vmem [resolvable:$true] %s166_s25 }
  0x1f   :  { %196 = vmatprep.mubr.msk.f32.mxu0 %vm58_vm1, %v52_v3  ;;  %190 = vmatprep.subr.mxu0 %v56_v2  ;;  %v181_v13 = vld [vmem:[%s328_s2] ss:$0 sm:$0xff]  ;;  %s245_s26 = scalar_lea.vmem %s167_s25, 256  ;;  %p250_p11 = scmp.lt.s32.totalorder %s167_s25, %s167_s25 }
  0x20   :  { %191 = vmatpush3.msra.mxu0 %v56_v2  ;;  %p246_p10 = scmp.ne.s32.totalorder %s167_s25, %s245_s26  ;;  %p251_p12 = scmp.lt.s32.totalorder %s245_s26, %s245_s26 }
  0x21   :  { %192 = vmatprep.subr.mxu0 %v55_v4 }
  0x22   :  { %193 = vmatpush3.msra.mxu0 %v55_v4  ;;  %p252_p13 = por %p251_p12, %p250_p11 }
  0x23   :  { %194 = vmatprep.subr.mxu0 %v54_v5 }
  0x24   :  { %195 = vmatpush3.msra.mxu0 %v54_v5  ;;  %v51_v7 = vld [vmem:[#allocation2 + $0x8] sm:$0xff]  ;;  %v50_v9 = vld [vmem:[#allocation2] sm:$0xff]  ;;  %p253_p0 = pnand %p252_p13, %p246_p10 }
  0x25   :  { %197 = vmatmul.mubr.msk.f32.vlgmr.msra.gmra.mxu0 %vm58_vm1, %v53_v6 }
  0xe5   :  { %v198_v8 = vpop.f32.mrf.mxu0 }
  0xe6   :  { %v141_v10 = vadd.f32 %v198_v8, %v51_v7 }
  0xe7   :  { %v131_v11 = vpop.f32.mrf.mxu0 }
  0xe8   :  { %144 = vst.msk [vmem:[#allocation2 + $0x8] sm:$0xff] %vm47_vm0, %v141_v10  ;;  %v140_v12 = vadd.f32 %v131_v11, %v50_v9 }
  0xea   :  { %143 = vst.msk [vmem:[#allocation2] sm:$0xff] %vm47_vm0, %v140_v12 }
  0xef   :  { %v149_v14 = vld [vmem:[#allocation2 + $0x8] sm:$0xff] }
  0xf0   :  { %v158_v15 = vadd.f32 %v181_v13, %v149_v14 }
  0xf1   :  { %v148_v16 = vld [vmem:[#allocation2] sm:$0xff] }
  0xf2   :  { %v157_v17 = vadd.f32 %v181_v13, %v148_v16  ;;  %160 = vst.msk [vmem:[#allocation8 + $0x8] sm:$0xff] %vm47_vm0, %v158_v15 }
  0xf4   :  { %159 = vst.msk [vmem:[#allocation8] sm:$0xff] %vm47_vm0, %v157_v17 }
  0xf5   :  { %256 = shalt.err (!%p253_p0)
}
  0xf6   :  { %172 = dma.vmem_to_hbm [thread:$0]  %s167_s25, 256, %s329_s3, [#allocation5], %s272_s15, %s272_s15, %s273_s16  }
  0xf7   :  { %269 = dma.done.wait [#allocation5], 256  }
  0xf8   :  { %270 = vsyncadd [#allocation5], 4294967040 }
  0xf9   :  { %176 = vsyncpa [#allocation4], 1 }
  0xfa   :  { %177 = vsyncpa [#allocation7], 1 }
  0xfb   :  { %178 = vsyncpa [#allocation5], 1 }

</bundles_post_ra>
